<compile_context>
chip_gen: v5e
topology: v5e:2x2
jax: 0.10.0
libtpu: 0.0.40
codegen_flags: <defaults>
</compile_context>

<pallas_src>
import jax
import jax.numpy as jnp
from jax import lax
from jax.experimental import pallas as pl
from jax.experimental.pallas import tpu as pltpu

INPUT_SIZE = 10
HIDDEN_SIZE = 20
NUM_CLASSES = 3
HID_PAD = 128  # hidden dim padded to full lane width (zero padding -> exact)


def _round_up(n, m):
    return ((n + m - 1) // m) * m


def mlp_kernel(x_ref, w1_ref, b1_ref, w2_ref, b2_ref, w3_ref, b3_ref, o_ref):
    cdt = w1_ref.dtype  # compute dtype for MXU inputs (f32 or bf16)
    x = x_ref[...].astype(cdt)                                  # (tile, 10)
    # l1 + ReLU   (K=10 contraction; padded output cols are exactly zero)
    h1 = jnp.dot(x, w1_ref[...], preferred_element_type=jnp.float32,
                 precision=lax.Precision.HIGHEST)
    h1 = jnp.maximum(h1 + b1_ref[...], 0.0)                     # (tile, 128) f32
    # l2 + ReLU   (full 128-wide MXU matmul)
    h2 = jnp.dot(h1.astype(cdt), w2_ref[...], preferred_element_type=jnp.float32,
                 precision=lax.Precision.HIGHEST)
    h2 = jnp.maximum(h2 + b2_ref[...], 0.0)                     # (tile, 128) f32
    # l3          (narrow N = NUM_CLASSES output -> no class masking needed)
    logits = jnp.dot(h2.astype(cdt), w3_ref[...], preferred_element_type=jnp.float32,
                     precision=lax.Precision.HIGHEST)
    logits = logits + b3_ref[...]                               # (tile, 3) f32
    # Numerically stable softmax over the class axis; exact division.
    m = jnp.max(logits, axis=-1, keepdims=True)
    e = jnp.exp(logits - m)
    o_ref[...] = (e / jnp.sum(e, axis=-1, keepdims=True)).astype(o_ref.dtype)


def pad_params(params, dtype=jnp.float32):
    """Pad weights once (hoisted out of the forward). dtype=bf16 halves HBM reads
    on v6e/v7x; biases stay f32 (post-accumulation VPU work stays f32, v5e-safe)."""
    w1, b1, w2, b2, w3, b3 = params
    w1_p = jnp.zeros((INPUT_SIZE, HID_PAD), dtype).at[:, :HIDDEN_SIZE].set(w1.astype(dtype))
    b1_p = jnp.zeros((1, HID_PAD), jnp.float32).at[:, :HIDDEN_SIZE].set(b1.reshape(1, -1))
    w2_p = jnp.zeros((HID_PAD, HID_PAD), dtype).at[:HIDDEN_SIZE, :HIDDEN_SIZE].set(w2.astype(dtype))
    b2_p = jnp.zeros((1, HID_PAD), jnp.float32).at[:, :HIDDEN_SIZE].set(b2.reshape(1, -1))
    w3_p = jnp.zeros((HID_PAD, NUM_CLASSES), dtype).at[:HIDDEN_SIZE, :].set(w3.astype(dtype))
    b3_p = b3.reshape(1, NUM_CLASSES).astype(jnp.float32)
    return (w1_p, b1_p, w2_p, b2_p, w3_p, b3_p)


def neural_net_forward(x, padded_params, block_rows=1024):
    """x: (B, INPUT_SIZE) f32.  padded_params: output of pad_params()."""
    w1, b1, w2, b2, w3, b3 = padded_params
    B = x.shape[0]
    x = x.astype(w1.dtype)  # boundary cast (no-op for f32; halves reads for bf16)

    # Row tile: big enough to amortize the ~0.35us/step overhead, but capped at
    # ceil(B/2) so mid-size batches still produce a >=2-step grid (both v7x TCs).
    tile = min(block_rows, max(8, _round_up(pl.cdiv(B, 2), 8)))
    grid = (pl.cdiv(B, tile),)

    # Weights/biases: constant index_map -> DMA'd once, VMEM-resident across grid.
    def resident(shape):
        nd = len(shape)
        return pl.BlockSpec(shape, lambda i, _nd=nd: (0,) * _nd)

    itemsize = jnp.dtype(w1.dtype).itemsize
    flops = 2 * B * (INPUT_SIZE * HID_PAD + HID_PAD * HID_PAD + HID_PAD * NUM_CLASSES)
    bytes_accessed = (
        itemsize * (B * INPUT_SIZE                     # x stream (narrow)
                    + INPUT_SIZE * HID_PAD
                    + HID_PAD * HID_PAD
                    + HID_PAD * NUM_CLASSES)           # resident weights
        + 4 * (2 * HID_PAD + NUM_CLASSES)              # f32 biases
        + 4 * B * NUM_CLASSES)                         # narrow f32 output

    return pl.pallas_call(
        mlp_kernel,
        out_shape=jax.ShapeDtypeStruct((B, NUM_CLASSES), jnp.float32),
        grid=grid,
        in_specs=[
            pl.BlockSpec((tile, INPUT_SIZE), lambda i: (i, 0)),  # x: tiled rows, un-padded lanes
            resident((INPUT_SIZE, HID_PAD)),
            resident((1, HID_PAD)),
            resident((HID_PAD, HID_PAD)),
            resident((1, HID_PAD)),
            resident((HID_PAD, NUM_CLASSES)),
            resident((1, NUM_CLASSES)),
        ],
        out_specs=pl.BlockSpec((tile, NUM_CLASSES), lambda i: (i, 0)),
        compiler_params=pltpu.CompilerParams(
            dimension_semantics=("parallel",),   # shard batch tiles across TCs on v7x
        ),
        cost_estimate=pl.CostEstimate(
            flops=flops,
            transcendentals=B * NUM_CLASSES,
            bytes_accessed=bytes_accessed,
        ),
    )(x, w1, b1, w2, b2, w3, b3)


def init_params(key):
    # Deterministic init mimicking PyTorch Linear default: U(+-1/sqrt(fan_in)),
    # stored transposed vs PyTorch ((in, out)) so the kernel computes x @ W + b.
    ks = jax.random.split(key, 6)

    def linear(kw, kb, fan_in, fan_out):
        bound = 1.0 / jnp.sqrt(jnp.float32(fan_in))
        w = jax.random.uniform(kw, (fan_in, fan_out), jnp.float32, -bound, bound)
        b = jax.random.uniform(kb, (1, fan_out), jnp.float32, -bound, bound)
        return w, b

    w1, b1 = linear(ks[0], ks[1], INPUT_SIZE, HIDDEN_SIZE)
    w2, b2 = linear(ks[2], ks[3], HIDDEN_SIZE, HIDDEN_SIZE)
    w3, b3 = linear(ks[4], ks[5], HIDDEN_SIZE, NUM_CLASSES)
    return (w1, b1, w2, b2, w3, b3)


def reference_forward(x, params):
    w1, b1, w2, b2, w3, b3 = params
    hp = lax.Precision.HIGHEST
    h1 = jnp.maximum(jnp.dot(x, w1, precision=hp) + b1, 0.0)
    h2 = jnp.maximum(jnp.dot(h1, w2, precision=hp) + b2, 0.0)
    logits = jnp.dot(h2, w3, precision=hp) + b3
    return jax.nn.softmax(logits, axis=1)


if __name__ == "__main__":
    key = jax.random.PRNGKey(0)
    k_x, k_x2, k_p = jax.random.split(key, 3)
    params = init_params(k_p)
    params_f32 = pad_params(params, jnp.float32)   # padded once, hoisted out of forward

    # Small-batch check (single grid step).
    B = 8
    x = jax.random.normal(k_x, (B, INPUT_SIZE), jnp.float32)
    out = jax.block_until_ready(neural_net_forward(x, params_f32))
    ref = reference_forward(x, params)
    assert out.shape == (B, NUM_CLASSES)
    assert jnp.allclose(out, ref, atol=1e-3, rtol=1e-3), float(jnp.max(jnp.abs(out - ref)))

    # Multi-block check: B=300 -> tile=152, grid=(2,), second block partial
    # (out-of-bounds rows are dropped on writeback).
    B2 = 300
    x2 = jax.random.normal(k_x2, (B2, INPUT_SIZE), jnp.float32)
    out2 = jax.block_until_ready(neural_net_forward(x2, params_f32))
    ref2 = reference_forward(x2, params)
    assert out2.shape == (B2, NUM_CLASSES)
    assert jnp.allclose(out2, ref2, atol=1e-3, rtol=1e-3), float(jnp.max(jnp.abs(out2 - ref2)))

    # bf16 MXU-input variant (halves remaining HBM reads on v6e/v7x); f32 accumulate,
    # so it still tracks the f32 reference closely.
    params_bf16 = pad_params(params, jnp.bfloat16)
    out3 = jax.block_until_ready(neural_net_forward(x2, params_bf16))
    assert out3.shape == (B2, NUM_CLASSES)
    assert jnp.allclose(out3, ref2, atol=3e-2, rtol=3e-2), float(jnp.max(jnp.abs(out3 - ref2)))

    print("KERNEL_OK")
</pallas_src>

<mosaic_0001>
module attributes {stable_mosaic.version = 11 : i64} {
  func.func @mlp_kernel(%arg0: i32, %arg1: memref<8x10xf32, #tpu.memory_space<vmem>>, %arg2: memref<10x128xf32, #tpu.memory_space<vmem>>, %arg3: memref<1x128xf32, #tpu.memory_space<vmem>>, %arg4: memref<128x128xf32, #tpu.memory_space<vmem>>, %arg5: memref<1x128xf32, #tpu.memory_space<vmem>>, %arg6: memref<128x3xf32, #tpu.memory_space<vmem>>, %arg7: memref<1x3xf32, #tpu.memory_space<vmem>>, %arg8: memref<8x3xf32, #tpu.memory_space<vmem>>) attributes {dimension_semantics = [#tpu.dimension_semantics<parallel>], iteration_bounds = array<i64: 1>, scalar_prefetch = 0 : i64, scratch_operands = 0 : i64, tpu.core_type = #tpu.core_type<tc>, window_params = [{transform_indices = @transform_0, window_bounds = array<i64: 8, 10>}, {pipeline_mode = #tpu.pipeline_mode<synchronous>, transform_indices = @transform_1, window_bounds = array<i64: 10, 128>}, {pipeline_mode = #tpu.pipeline_mode<synchronous>, transform_indices = @transform_2, window_bounds = array<i64: 1, 128>}, {pipeline_mode = #tpu.pipeline_mode<synchronous>, transform_indices = @transform_3, window_bounds = array<i64: 128, 128>}, {pipeline_mode = #tpu.pipeline_mode<synchronous>, transform_indices = @transform_4, window_bounds = array<i64: 1, 128>}, {pipeline_mode = #tpu.pipeline_mode<synchronous>, transform_indices = @transform_5, window_bounds = array<i64: 128, 3>}, {pipeline_mode = #tpu.pipeline_mode<synchronous>, transform_indices = @transform_6, window_bounds = array<i64: 1, 3>}, {transform_indices = @transform_7, window_bounds = array<i64: 8, 3>}]} {
    %c0 = arith.constant 0 : index
    %c0_0 = arith.constant 0 : index
    %0 = vector.load %arg1[%c0, %c0_0] : memref<8x10xf32, #tpu.memory_space<vmem>>, vector<8x10xf32>
    %c0_1 = arith.constant 0 : index
    %c0_2 = arith.constant 0 : index
    %1 = vector.load %arg2[%c0_1, %c0_2] : memref<10x128xf32, #tpu.memory_space<vmem>>, vector<10x128xf32>
    %cst = arith.constant dense<0.000000e+00> : vector<8x128xf32>
    %2 = tpu.matmul %0, %1, %cst {dimension_numbers = #tpu.dot_dimension_numbers<[1], [0], [0], [1], [0, 0, 1, 1], [], []>, precision = #tpu.contract_precision<fp32>} : vector<8x10xf32>, vector<10x128xf32>, vector<8x128xf32> -> vector<8x128xf32>
    %c0_3 = arith.constant 0 : index
    %c0_4 = arith.constant 0 : index
    %3 = vector.load %arg3[%c0_3, %c0_4] : memref<1x128xf32, #tpu.memory_space<vmem>>, vector<1x128xf32>
    %4 = vector.broadcast %3 : vector<1x128xf32> to vector<8x128xf32>
    %5 = arith.addf %2, %4 : vector<8x128xf32>
    %cst_5 = arith.constant 0.000000e+00 : f32
    %6 = vector.broadcast %cst_5 : f32 to vector<8x128xf32>
    %7 = arith.maximumf %5, %6 : vector<8x128xf32>
    %c0_6 = arith.constant 0 : index
    %c0_7 = arith.constant 0 : index
    %8 = vector.load %arg4[%c0_6, %c0_7] : memref<128x128xf32, #tpu.memory_space<vmem>>, vector<128x128xf32>
    %cst_8 = arith.constant dense<0.000000e+00> : vector<8x128xf32>
    %9 = tpu.matmul %7, %8, %cst_8 {dimension_numbers = #tpu.dot_dimension_numbers<[1], [0], [0], [1], [0, 0, 1, 1], [], []>, precision = #tpu.contract_precision<fp32>} : vector<8x128xf32>, vector<128x128xf32>, vector<8x128xf32> -> vector<8x128xf32>
    %c0_9 = arith.constant 0 : index
    %c0_10 = arith.constant 0 : index
    %10 = vector.load %arg5[%c0_9, %c0_10] : memref<1x128xf32, #tpu.memory_space<vmem>>, vector<1x128xf32>
    %11 = vector.broadcast %10 : vector<1x128xf32> to vector<8x128xf32>
    %12 = arith.addf %9, %11 : vector<8x128xf32>
    %cst_11 = arith.constant 0.000000e+00 : f32
    %13 = vector.broadcast %cst_11 : f32 to vector<8x128xf32>
    %14 = arith.maximumf %12, %13 : vector<8x128xf32>
    %c0_12 = arith.constant 0 : index
    %c0_13 = arith.constant 0 : index
    %15 = vector.load %arg6[%c0_12, %c0_13] : memref<128x3xf32, #tpu.memory_space<vmem>>, vector<128x3xf32>
    %cst_14 = arith.constant dense<0.000000e+00> : vector<8x3xf32>
    %16 = tpu.matmul %14, %15, %cst_14 {dimension_numbers = #tpu.dot_dimension_numbers<[1], [0], [0], [1], [0, 0, 1, 1], [], []>, precision = #tpu.contract_precision<fp32>} : vector<8x128xf32>, vector<128x3xf32>, vector<8x3xf32> -> vector<8x3xf32>
    %c0_15 = arith.constant 0 : index
    %c0_16 = arith.constant 0 : index
    %17 = vector.load %arg7[%c0_15, %c0_16] : memref<1x3xf32, #tpu.memory_space<vmem>>, vector<1x3xf32>
    %18 = vector.broadcast %17 : vector<1x3xf32> to vector<8x3xf32>
    %19 = arith.addf %16, %18 : vector<8x3xf32>
    %cst_17 = arith.constant dense<0xFF800000> : vector<8xf32>
    %20 = vector.multi_reduction <maximumf>, %19, %cst_17 [1] : vector<8x3xf32> to vector<8xf32>
    %21 = vector.shape_cast %20 : vector<8xf32> to vector<8x1xf32>
    %22 = vector.broadcast %21 : vector<8x1xf32> to vector<8x3xf32>
    %23 = arith.subf %19, %22 : vector<8x3xf32>
    %24 = math.exp %23 : vector<8x3xf32>
    %cst_18 = arith.constant dense<0.000000e+00> : vector<8xf32>
    %25 = vector.multi_reduction <add>, %24, %cst_18 [1] : vector<8x3xf32> to vector<8xf32>
    %26 = vector.shape_cast %25 : vector<8xf32> to vector<8x1xf32>
    %27 = vector.broadcast %26 : vector<8x1xf32> to vector<8x3xf32>
    %28 = arith.divf %24, %27 : vector<8x3xf32>
    %c0_19 = arith.constant 0 : index
    %c0_20 = arith.constant 0 : index
    %29 = vector.load %arg8[%c0_19, %c0_20] : memref<8x3xf32, #tpu.memory_space<vmem>>, vector<8x3xf32>
    tpu.vector_store %arg8[%c0_19, %c0_20], %28 {strides = array<i32>} : memref<8x3xf32, #tpu.memory_space<vmem>>, vector<8x3xf32>,
    return
  }
  func.func @transform_0(%arg0: i32) -> (i32, i32) {
    %c0_i32 = arith.constant 0 : i32
    %c0_i32_0 = arith.constant 0 : i32
    return %arg0, %c0_i32 : i32, i32
  }
  func.func @transform_1(%arg0: i32) -> (i32, i32) {
    %c0_i32 = arith.constant 0 : i32
    %c0_i32_0 = arith.constant 0 : i32
    %c0_i32_1 = arith.constant 0 : i32
    return %c0_i32, %c0_i32_0 : i32, i32
  }
  func.func @transform_2(%arg0: i32) -> (i32, i32) {
    %c0_i32 = arith.constant 0 : i32
    %c0_i32_0 = arith.constant 0 : i32
    %c0_i32_1 = arith.constant 0 : i32
    return %c0_i32, %c0_i32_0 : i32, i32
  }
  func.func @transform_3(%arg0: i32) -> (i32, i32) {
    %c0_i32 = arith.constant 0 : i32
    %c0_i32_0 = arith.constant 0 : i32
    %c0_i32_1 = arith.constant 0 : i32
    return %c0_i32, %c0_i32_0 : i32, i32
  }
  func.func @transform_4(%arg0: i32) -> (i32, i32) {
    %c0_i32 = arith.constant 0 : i32
    %c0_i32_0 = arith.constant 0 : i32
    %c0_i32_1 = arith.constant 0 : i32
    return %c0_i32, %c0_i32_0 : i32, i32
  }
  func.func @transform_5(%arg0: i32) -> (i32, i32) {
    %c0_i32 = arith.constant 0 : i32
    %c0_i32_0 = arith.constant 0 : i32
    %c0_i32_1 = arith.constant 0 : i32
    return %c0_i32, %c0_i32_0 : i32, i32
  }
  func.func @transform_6(%arg0: i32) -> (i32, i32) {
    %c0_i32 = arith.constant 0 : i32
    %c0_i32_0 = arith.constant 0 : i32
    %c0_i32_1 = arith.constant 0 : i32
    return %c0_i32, %c0_i32_0 : i32, i32
  }
  func.func @transform_7(%arg0: i32) -> (i32, i32) {
    %c0_i32 = arith.constant 0 : i32
    %c0_i32_0 = arith.constant 0 : i32
    return %arg0, %c0_i32 : i32, i32
  }
}

</mosaic_0001>

<bundles_post_ra>
// kernel: tpu_custom_call.1
= control target key start
LH: loop header
LB: loop body
LE: loop exit
PB: predicated region body
PF: predicated region fallthrough
CT: control target
= control target key end

     0   :  { %12 = vsyncpa [#allocation3], 0  ;;  %s1663_s0 = inlined_call_operand.hbm [shape: f32[8,10], index: 0, kind: input, shape index: {}]   ;;  %s1664_s1 = inlined_call_operand.hbm [shape: f32[10,128], index: 1, kind: input, shape index: {}]   ;;  %s1665_s2 = inlined_call_operand.vmem [shape: f32[1,128], index: 2, kind: input, shape index: {}]   ;;  %s1666_s3 = inlined_call_operand.vmem [shape: f32[128,128], index: 3, kind: input, shape index: {}]   ;;  %s1667_s4 = inlined_call_operand.vmem [shape: f32[1,128], index: 4, kind: input, shape index: {}]   ;;  %s1668_s5 = inlined_call_operand.vmem [shape: f32[128,3], index: 5, kind: input, shape index: {}]   ;;  %s1669_s6 = inlined_call_operand.vmem [shape: f32[1,3], index: 6, kind: input, shape index: {}]   ;;  %s1670_s7 = inlined_call_operand.vmem [shape: f32[8,3], index: 7, kind: output, shape index: {}]  }
   0x1   :  { %s19_s26 = sshll.u32 %s1663_s0, 4  ;;  %s20_s26 = int_to_ptr.hbm [resolvable:$true] %s19_s26 }
   0x2   :  { %13 = vsyncpa [#allocation5], 0  ;;  %s1049_s27 = smov [#allocation2]   ;;  %s29_s8 = sshll.u32 %s1664_s1, 4  ;;  %s30_s8 = int_to_ptr.hbm [resolvable:$true] %s29_s8 }
   0x3   :  { %s21_s28 = sshll.u32 %s1049_s27, 4  ;;  %s1050_s9 = smov [#allocation4]   ;;  %s22_s28 = int_to_ptr.vmem [resolvable:$true] %s21_s28 }
   0x4   :  { %24 = dma.hbm_to_vmem [thread:$0]  %s20_s26, 128, %s22_s28, [#allocation3]  }
   0x5   :  { %s31_s10 = sshll.u32 %s1050_s9, 4  ;;  %s1051_s11 = smov 128   ;;  %s32_s10 = int_to_ptr.vmem [resolvable:$true] %s31_s10 }
   0x6   :  { %s1052_s12 = smov 8  }
   0x7   :  { %37 = dma.hbm_to_vmem [thread:$0]  %s30_s8, 256, %s32_s10, [#allocation5], %s1051_s11, %s1051_s11, %s1052_s12  }
   0x8   :  { %1045 = dma.done.wait [#allocation3], 128  }
   0x9   :  { %1046 = vsyncadd [#allocation3], 4294967168 }
   0xa   :  { %1047 = dma.done.wait [#allocation5], 256  }
   0xb   :  { %1048 = vsyncadd [#allocation5], 4294967040  ;;  %vm67_vm0 = vcmask 1041408   ;;  %vm63_vm1 = vcmask 80896   ;;  %v58_v0 = vld [vmem:[#allocation4 + $0x8] sm:$0x3] }
   0xc   :  { %v57_v1 = vld [vmem:[#allocation4] sm:$0xff]  ;;  %v56_v2 = vld [vmem:[#allocation2] sm:$0xff]  ;;  %v69_v3 = vsel %vm67_vm0, %v58_v0, 0  ;;  %v246_v6 = vld [vmem:[%s1666_s3 + $0x78] sm:$0xff]  ;;  %vm954_vm2 = vcmask 23552  }
   0xd   :  { %v1099_v4 = vand.u32 4294901760, %v57_v1  ;;  %v65_v5 = vsel %vm63_vm1, %v56_v2, 0  ;;  %v245_v7 = vld [vmem:[%s1666_s3 + $0x70] sm:$0xff]  ;;  %v244_v8 = vld [vmem:[%s1666_s3 + $0x68] sm:$0xff]  ;;  %v1110_v9 = vand.u32 4294901760, %v69_v3  ;;  %v1114_v11 = vand.u32 4294901760, %v246_v6 }
   0xe   :  { %v1112_v10 = vand.u32 4294901760, %v65_v5  ;;  %v1116_v12 = vand.u32 4294901760, %v245_v7  ;;  %v243_v13 = vld [vmem:[%s1666_s3 + $0x60] sm:$0xff]  ;;  %v242_v14 = vld [vmem:[%s1666_s3 + $0x58] sm:$0xff]  ;;  %v1125_v16 = vand.u32 4294901760, %v244_v8  ;;  %v241_v19 = vld [vmem:[%s1666_s3 + $0x50] sm:$0xff] }
   0xf   :  { %v119_v15 = vsub.f32 %v57_v1, %v1099_v4  ;;  %v1127_v17 = vand.u32 4294901760, %v243_v13  ;;  %v1129_v18 = vand.u32 4294901760, %v242_v14  ;;  %v113_v20 = vsub.f32 %v69_v3, %v1110_v9  ;;  %86 = vmatpush.msra.mxu0 %v1110_v9  ;;  %170 = vmatpush.msra.mxu3 %v1110_v9  ;;  %v240_v42 = vld [vmem:[%s1666_s3 + $0x48] sm:$0xff]  ;;  %v239_v43 = vld [vmem:[%s1666_s3 + $0x40] sm:$0xff]  ;;  %v238_v44 = vld [vmem:[%s1666_s3 + $0x38] sm:$0xff] }
  0x10   :  { %v90_v21 = vsub.f32 %v65_v5, %v1112_v10  ;;  %v1139_v22 = vsub.f32 %v246_v6, %v1114_v11  ;;  %v1141_v23 = vand.u32 4294901760, %v241_v19  ;;  %v1144_v25 = vsub.f32 %v245_v7, %v1116_v12  ;;  %v237_v49 = vld [vmem:[%s1666_s3 + $0x30] sm:$0xff]  ;;  %v236_v50 = vld [vmem:[%s1666_s3 + $0x28] sm:$0xff]  ;;  %v235_v54 = vld [vmem:[%s1666_s3 + $0x20] sm:$0xff] }
  0x11   :  { %v120_v24 = vand.u32 4294901760, %v119_v15  ;;  %v1147_v26 = vsub.f32 %v244_v8, %v1125_v16  ;;  %v1150_v27 = vsub.f32 %v243_v13, %v1127_v17  ;;  %145 = vmatpush.msra.mxu2 %v113_v20  ;;  %88 = vmatpush.msra.mxu0 %v1099_v4  ;;  %v114_v28 = vand.u32 4294901760, %v113_v20  ;;  %v234_v3 = vld [vmem:[%s1666_s3 + $0x18] sm:$0xff] }
  0x12   :  { %v91_v29 = vand.u32 4294901760, %v90_v21  ;;  %v294_v30 = vand.u32 4294901760, %v1139_v22  ;;  %v1155_v31 = vsub.f32 %v242_v14, %v1129_v18  ;;  %172 = vmatpush.msra.mxu3 %v1099_v4  ;;  %v300_v33 = vand.u32 4294901760, %v1144_v25  ;;  %v233_v14 = vld [vmem:[%s1666_s3 + $0x10] sm:$0xff] }
  0x13   :  { %v121_v32 = vsub.f32 %v119_v15, %v120_v24  ;;  %v306_v34 = vand.u32 4294901760, %v1147_v26  ;;  %v312_v35 = vand.u32 4294901760, %v1150_v27  ;;  %148 = vmatpush.msra.mxu2 %v119_v15  ;;  %v115_v36 = vsub.f32 %v113_v20, %v114_v28  ;;  %197 = vmatpush.msrb.mxu0 %v114_v28 }
  0x14   :  { %v92_v37 = vsub.f32 %v90_v21, %v91_v29  ;;  %176 = vmatmul.f32.vlgmr.msra.gmra.mxu3 %v91_v29  ;;  %v295_v38 = vsub.f32 %v1139_v22, %v294_v30  ;;  %v318_v39 = vand.u32 4294901760, %v1155_v31  ;;  %151 = vmatmul.f32.vlgmr.msra.gmra.mxu2 %v90_v21  ;;  %v301_v40 = vsub.f32 %v1144_v25, %v300_v33 }
  0x15   :  { %v307_v41 = vsub.f32 %v1147_v26, %v306_v34  ;;  %v116_v45 = vand.u32 4294901760, %v115_v36  ;;  %v122_v47 = vand.u32 4294901760, %v121_v32  ;;  %252 = vmatpush.msrb.mxu2 %v1114_v11  ;;  %201 = vmatpush.msrb.mxu0 %v120_v24  ;;  %v313_v52 = vsub.f32 %v1150_v27, %v312_v35 }
  0x16   :  { %v93_v46 = vand.u32 4294901760, %v92_v37  ;;  %v296_v48 = vand.u32 4294901760, %v295_v38  ;;  %v302_v51 = vand.u32 4294901760, %v301_v40  ;;  %v1191_v53 = vsub.f32 %v241_v19, %v1141_v23  ;;  %v231_v37 = vld [vmem:[%s1666_s3] sm:$0xff] }
  0x17   :  { %117 = vmatpush.msra.mxu1 %v116_v45  ;;  %v319_v55 = vsub.f32 %v1155_v31, %v318_v39  ;;  %v1199_v56 = vand.u32 4294901760, %v240_v42  ;;  %v1201_v57 = vand.u32 4294901760, %v239_v43  ;;  %v1203_v58 = vand.u32 4294901760, %v238_v44  ;;  %254 = vmatpush.msrb.mxu2 %v1116_v12 }
  0x18   :  { %94 = vmatmul.f32.vlgmr.msra.gmra.mxu0 %v93_v46  ;;  %297 = vmatpush.msrb.mxu3 %v296_v48  ;;  %v308_v59 = vand.u32 4294901760, %v307_v41  ;;  %v324_v60 = vand.u32 4294901760, %v1191_v53  ;;  %v1207_v61 = vand.u32 4294901760, %v237_v49  ;;  %v1209_v62 = vand.u32 4294901760, %v236_v50 }
  0x19   :  { %123 = vmatpush.msra.mxu1 %v122_v47  ;;  %v1212_v63 = vsub.f32 %v240_v42, %v1199_v56  ;;  %v1215_v0 = vsub.f32 %v239_v43, %v1201_v57  ;;  %v1218_v1 = vsub.f32 %v238_v44, %v1203_v58  ;;  %v1220_v2 = vand.u32 4294901760, %v235_v54  ;;  %395 = vmatpush.msra.mxu0 %v1139_v22  ;;  %v606_v22 = vld [vmem:[%s1668_s5 + $0x68] sm:$0xff] }
  0x1a   :  { %125 = vmatmul.f32.vlgmr.msra.gmra.mxu1 %v1112_v10  ;;  %303 = vmatpush.msrb.mxu3 %v302_v51  ;;  %v314_v5 = vand.u32 4294901760, %v313_v52  ;;  %v325_v6 = vsub.f32 %v1191_v53, %v324_v60  ;;  %v1231_v7 = vsub.f32 %v237_v49, %v1207_v61  ;;  %v320_v15 = vand.u32 4294901760, %v319_v55 }
  0x1b   :  { %222 = vmatpush.msrb.mxu1 %v1110_v9  ;;  %256 = vmatpush.msrb.mxu2 %v1125_v16  ;;  %v330_v8 = vand.u32 4294901760, %v1212_v63  ;;  %v336_v13 = vand.u32 4294901760, %v1215_v0  ;;  %v342_v19 = vand.u32 4294901760, %v1218_v1  ;;  %v1242_v20 = vsub.f32 %v236_v50, %v1209_v62 }
  0x1c   :  { %309 = vmatpush.msrb.mxu3 %v308_v59  ;;  %v1244_v21 = vand.u32 4294901760, %v234_v3  ;;  %398 = vmatpush.msra.mxu0 %v1144_v25  ;;  %v1253_v24 = vsub.f32 %v235_v54, %v1220_v2  ;;  %v326_v28 = vand.u32 4294901760, %v325_v6  ;;  %v348_v32 = vand.u32 4294901760, %v1231_v7 }
  0x1d   :  { %224 = vmatpush.msrb.mxu1 %v1099_v4  ;;  %v331_v9 = vsub.f32 %v1212_v63, %v330_v8  ;;  %258 = vmatpush.msrb.mxu2 %v1127_v17  ;;  %v337_v29 = vsub.f32 %v1215_v0, %v336_v13  ;;  %v1259_v36 = vand.u32 4294901760, %v233_v14  ;;  %v232_v4 = vld [vmem:[%s1666_s3 + $0x8] sm:$0xff]  ;;  %v343_v40 = vsub.f32 %v1218_v1, %v342_v19 }
  0x1e   :  { %315 = vmatpush.msrb.mxu3 %v314_v5  ;;  %v354_v41 = vand.u32 4294901760, %v1242_v20  ;;  %v1275_v42 = vsub.f32 %v234_v3, %v1244_v21  ;;  %401 = vmatpush.msra.mxu0 %v1147_v26  ;;  %v360_v43 = vand.u32 4294901760, %v1253_v24  ;;  %v1280_v44 = vand.u32 4294901760, %v232_v4 }
  0x1f   :  { %448 = vmatpush.msra.mxu1 %v1114_v11  ;;  %260 = vmatpush.msrb.mxu2 %v1129_v18  ;;  %v332_v38 = vand.u32 4294901760, %v331_v9  ;;  %v338_v45 = vand.u32 4294901760, %v337_v29  ;;  %v349_v46 = vsub.f32 %v1231_v7, %v348_v32  ;;  %v1288_v47 = vsub.f32 %v233_v14, %v1259_v36 }
  0x20   :  { %203 = vmatmul.f32.vlgmr.msrb.gmra.mxu0 %v1112_v10  ;;  %321 = vmatpush.msrb.mxu3 %v320_v15  ;;  %v1290_v48 = vand.u32 4294901760, %v231_v37  ;;  %v344_v49 = vand.u32 4294901760, %v343_v40  ;;  %v366_v50 = vand.u32 4294901760, %v1275_v42  ;;  %v1299_v51 = vsub.f32 %v232_v4, %v1280_v44 }
  0x21   :  { %262 = vmatpush.msrb.mxu2 %v1141_v23  ;;  %450 = vmatpush.msra.mxu1 %v1116_v12  ;;  %v350_v52 = vand.u32 4294901760, %v349_v46  ;;  %v361_v54 = vsub.f32 %v1253_v24, %v360_v43  ;;  %v372_v55 = vand.u32 4294901760, %v1288_v47 }
  0x22   :  { %226 = vmatmul.f32.vlgmr.msrb.gmra.mxu1 %v1112_v10  ;;  %327 = vmatpush.msrb.mxu3 %v326_v28  ;;  %v355_v10 = vsub.f32 %v1242_v20, %v354_v41  ;;  %v1309_v59 = vsub.f32 %v231_v37, %v1290_v48  ;;  %v367_v5 = vsub.f32 %v1275_v42, %v366_v50  ;;  %v378_v6 = vand.u32 4294901760, %v1299_v51 }
  0x23   :  { %264 = vmatpush.msrb.mxu2 %v1199_v56  ;;  %404 = vmatpush.msra.mxu0 %v1150_v27  ;;  %v362_v14 = vand.u32 4294901760, %v361_v54  ;;  %v373_v15 = vsub.f32 %v1288_v47, %v372_v55 }
  0x24   :  { %333 = vmatpush.msrb.mxu3 %v332_v38  ;;  %452 = vmatpush.msra.mxu1 %v1125_v16  ;;  %v356_v3 = vand.u32 4294901760, %v355_v10  ;;  %v384_v9 = vand.u32 4294901760, %v1309_v59  ;;  %v368_v28 = vand.u32 4294901760, %v367_v5  ;;  %v379_v29 = vsub.f32 %v1299_v51, %v378_v6 }
  0x25   :  { %266 = vmatpush.msrb.mxu2 %v1201_v57  ;;  %407 = vmatpush.msra.mxu0 %v1155_v31  ;;  %v374_v4 = vand.u32 4294901760, %v373_v15  ;;  %v605_v31 = vld [vmem:[%s1668_s5 + $0x60] sm:$0xff] }
  0x26   :  { %339 = vmatpush.msrb.mxu3 %v338_v45  ;;  %454 = vmatpush.msra.mxu1 %v1127_v17  ;;  %v385_v37 = vsub.f32 %v1309_v59, %v384_v9  ;;  %v380_v38 = vand.u32 4294901760, %v379_v29 }
  0x27   :  { %268 = vmatpush.msrb.mxu2 %v1203_v58  ;;  %410 = vmatpush.msra.mxu0 %v1191_v53 }
  0x28   :  { %345 = vmatpush.msrb.mxu3 %v344_v49  ;;  %456 = vmatpush.msra.mxu1 %v1129_v18  ;;  %v386_v40 = vand.u32 4294901760, %v385_v37  ;;  %v599_v49 = vld [vmem:[%s1668_s5 + $0x30] sm:$0xff]  ;;  %v596_v37 = vld [vmem:[%s1668_s5 + $0x18] sm:$0xff] }
  0x29   :  { %270 = vmatpush.msrb.mxu2 %v1207_v61  ;;  %413 = vmatpush.msra.mxu0 %v1212_v63  ;;  %v1510_v15 = vand.u32 4294901760, %v599_v49 }
  0x2a   :  { %351 = vmatpush.msrb.mxu3 %v350_v52  ;;  %458 = vmatpush.msra.mxu1 %v1141_v23  ;;  %v598_v52 = vld [vmem:[%s1668_s5 + $0x28] sm:$0xff] }
  0x2b   :  { %272 = vmatpush.msrb.mxu2 %v1209_v62  ;;  %416 = vmatpush.msra.mxu0 %v1215_v0 }
  0x2c   :  { %357 = vmatpush.msrb.mxu3 %v356_v3  ;;  %460 = vmatpush.msra.mxu1 %v1199_v56  ;;  %v597_v3 = vld [vmem:[%s1668_s5 + $0x20] sm:$0xff] }
  0x2d   :  { %274 = vmatpush.msrb.mxu2 %v1220_v2  ;;  %419 = vmatpush.msra.mxu0 %v1218_v1 }
  0x2e   :  { %363 = vmatpush.msrb.mxu3 %v362_v14  ;;  %462 = vmatpush.msra.mxu1 %v1201_v57 }
  0x2f   :  { %276 = vmatpush.msrb.mxu2 %v1244_v21  ;;  %422 = vmatpush.msra.mxu0 %v1231_v7 }
  0x30   :  { %369 = vmatpush.msrb.mxu3 %v368_v28  ;;  %464 = vmatpush.msra.mxu1 %v1203_v58 }
  0x31   :  { %278 = vmatpush.msrb.mxu2 %v1259_v36  ;;  %425 = vmatpush.msra.mxu0 %v1242_v20 }
  0x32   :  { %375 = vmatpush.msrb.mxu3 %v374_v4  ;;  %466 = vmatpush.msra.mxu1 %v1207_v61  ;;  %v1515_v4 = vand.u32 4294901760, %v598_v52 }
  0x33   :  { %280 = vmatpush.msrb.mxu2 %v1280_v44  ;;  %428 = vmatpush.msra.mxu0 %v1253_v24 }
  0x34   :  { %381 = vmatpush.msrb.mxu3 %v380_v38  ;;  %468 = vmatpush.msra.mxu1 %v1209_v62 }
  0x35   :  { %282 = vmatpush.msrb.mxu2 %v1290_v48  ;;  %431 = vmatpush.msra.mxu0 %v1275_v42 }
  0x36   :  { %387 = vmatpush.msrb.mxu3 %v386_v40  ;;  %470 = vmatpush.msra.mxu1 %v1220_v2 }
  0x37   :  { %489 = vmatpush.msra.mxu2 %v294_v30  ;;  %434 = vmatpush.msra.mxu0 %v1288_v47  ;;  %v1421_v30 = vand.u32 4294901760, %v606_v22  ;;  %v601_v47 = vld [vmem:[%s1668_s5 + $0x40] sm:$0xff] }
  0x38   :  { %556 = vmatpush.msra.mxu3 %v1114_v11  ;;  %472 = vmatpush.msra.mxu1 %v1244_v21  ;;  %v990_v11 = vld [vmem:[%s1665_s2] ss:$0 sm:$0xff] }
  0x39   :  { %493 = vmatpush.msra.mxu2 %v300_v33  ;;  %437 = vmatpush.msra.mxu0 %v1299_v51  ;;  %v604_v33 = vld [vmem:[%s1668_s5 + $0x58] sm:$0xff] }
  0x3a   :  { %558 = vmatpush.msra.mxu3 %v1116_v12  ;;  %474 = vmatpush.msra.mxu1 %v1259_v36  ;;  %v1434_v53 = vand.u32 4294901760, %v604_v33 }
  0x3b   :  { %497 = vmatpush.msra.mxu2 %v306_v34  ;;  %440 = vmatpush.msra.mxu0 %v1309_v59  ;;  %v603_v34 = vld [vmem:[%s1668_s5 + $0x50] sm:$0xff] }
  0x3c   :  { %560 = vmatpush.msra.mxu3 %v1125_v16  ;;  %476 = vmatpush.msra.mxu1 %v1280_v44 }
  0x3d   :  { %501 = vmatpush.msra.mxu2 %v312_v35 }
  0x3e   :  { %562 = vmatpush.msra.mxu3 %v1127_v17  ;;  %478 = vmatpush.msra.mxu1 %v1290_v48  ;;  %v608_v17 = vld [vmem:[%s1668_s5 + $0x78] sm:$0xff] }
  0x3f   :  { %505 = vmatpush.msra.mxu2 %v318_v39  ;;  %v1417_v26 = vand.u32 4294901760, %v608_v17  ;;  %v1432_v39 = vand.u32 4294901760, %v605_v31 }
  0x40   :  { %564 = vmatpush.msra.mxu3 %v1129_v18  ;;  %v607_v18 = vld [vmem:[%s1668_s5 + $0x70] sm:$0xff] }
  0x41   :  { %509 = vmatpush.msra.mxu2 %v324_v60  ;;  %v1419_v27 = vand.u32 4294901760, %v607_v18  ;;  %v1442_v60 = vsub.f32 %v608_v17, %v1417_v26  ;;  %614 = vmatpush.msrb.mxu0 %v1417_v26  ;;  %v1454_v1 = vsub.f32 %v605_v31, %v1432_v39  ;;  %v1541_v31 = vand.u32 4294901760, %v596_v37 }
  0x42   :  { %566 = vmatpush.msra.mxu3 %v1141_v23 }
  0x43   :  { %513 = vmatpush.msra.mxu2 %v330_v8  ;;  %v656_v8 = vand.u32 4294901760, %v1442_v60  ;;  %616 = vmatpush.msrb.mxu0 %v1419_v27  ;;  %v674_v24 = vand.u32 4294901760, %v1454_v1 }
  0x44   :  { %568 = vmatpush.msra.mxu3 %v1199_v56  ;;  %v1436_v56 = vand.u32 4294901760, %v603_v34 }
  0x45   :  { %517 = vmatpush.msra.mxu2 %v336_v13  ;;  %618 = vmatpush.msrb.mxu0 %v1421_v30  ;;  %v675_v45 = vsub.f32 %v1454_v1, %v674_v24 }
  0x46   :  { %570 = vmatpush.msra.mxu3 %v1201_v57  ;;  %v602_v57 = vld [vmem:[%s1668_s5 + $0x48] sm:$0xff]  ;;  %v1460_v7 = vsub.f32 %v603_v34, %v1436_v56 }
  0x47   :  { %521 = vmatpush.msra.mxu2 %v342_v19  ;;  %v1451_v63 = vand.u32 4294901760, %v602_v57  ;;  %620 = vmatpush.msrb.mxu0 %v1432_v39  ;;  %v676_v28 = vand.u32 4294901760, %v675_v45 }
  0x48   :  { %572 = vmatpush.msra.mxu3 %v1203_v58  ;;  %v686_v46 = vand.u32 4294901760, %v1460_v7 }
  0x49   :  { %525 = vmatpush.msra.mxu2 %v348_v32  ;;  %622 = vmatpush.msrb.mxu0 %v1434_v53 }
  0x4a   :  { %574 = vmatpush.msra.mxu3 %v1207_v61  ;;  %v1445_v61 = vsub.f32 %v607_v18, %v1419_v27  ;;  %v687_v29 = vsub.f32 %v1460_v7, %v686_v46 }
  0x4b   :  { %529 = vmatpush.msra.mxu2 %v354_v41  ;;  %v657_v41 = vsub.f32 %v1442_v60, %v656_v8  ;;  %624 = vmatpush.msrb.mxu0 %v1436_v56 }
  0x4c   :  { %576 = vmatpush.msra.mxu3 %v1209_v62  ;;  %v1448_v62 = vsub.f32 %v606_v22, %v1421_v30  ;;  %v662_v13 = vand.u32 4294901760, %v1445_v61  ;;  %v688_v34 = vand.u32 4294901760, %v687_v29  ;;  %v594_v29 = vld [vmem:[%s1668_s5 + $0x8] sm:$0xff] }
  0x4d   :  { %533 = vmatpush.msra.mxu2 %v360_v43  ;;  %626 = vmatpush.msrb.mxu0 %v1451_v63 }
  0x4e   :  { %578 = vmatpush.msra.mxu3 %v1220_v2  ;;  %v1457_v2 = vsub.f32 %v604_v33, %v1434_v53  ;;  %v668_v19 = vand.u32 4294901760, %v1448_v62  ;;  %v663_v42 = vsub.f32 %v1445_v61, %v662_v13 }
  0x4f   :  { %537 = vmatpush.msra.mxu2 %v366_v50  ;;  %v658_v50 = vand.u32 4294901760, %v657_v41 }
  0x50   :  { %580 = vmatpush.msra.mxu3 %v1244_v21  ;;  %v680_v32 = vand.u32 4294901760, %v1457_v2  ;;  %v669_v43 = vsub.f32 %v1448_v62, %v668_v19  ;;  %v664_v51 = vand.u32 4294901760, %v663_v42  ;;  %v1558_v42 = vsub.f32 %v596_v37, %v1541_v31 }
  0x51   :  { %541 = vmatpush.msra.mxu2 %v372_v55  ;;  %659 = vmatpush.msrb.mxu1 %v658_v50 }
  0x52   :  { %582 = vmatpush.msra.mxu3 %v1259_v36  ;;  %v1469_v36 = vsub.f32 %v602_v57, %v1451_v63  ;;  %v681_v55 = vsub.f32 %v1457_v2, %v680_v32  ;;  %v670_v5 = vand.u32 4294901760, %v669_v43  ;;  %v728_v50 = vand.u32 4294901760, %v1558_v42 }
  0x53   :  { %545 = vmatpush.msra.mxu2 %v378_v6  ;;  %v1505_v6 = vand.u32 4294901760, %v601_v47  ;;  %665 = vmatpush.msrb.mxu1 %v664_v51 }
  0x54   :  { %584 = vmatpush.msra.mxu3 %v1280_v44  ;;  %v692_v59 = vand.u32 4294901760, %v1469_v36  ;;  %v682_v17 = vand.u32 4294901760, %v681_v55  ;;  %v729_v55 = vsub.f32 %v1558_v42, %v728_v50 }
  0x55   :  { %549 = vmatpush.msra.mxu2 %v384_v9  ;;  %v1521_v38 = vsub.f32 %v601_v47, %v1505_v6  ;;  %671 = vmatpush.msrb.mxu1 %v670_v5 }
  0x56   :  { %586 = vmatpush.msra.mxu3 %v1290_v48  ;;  %v600_v48 = vld [vmem:[%s1668_s5 + $0x38] sm:$0xff]  ;;  %v693_v18 = vsub.f32 %v1469_v36, %v692_v59  ;;  %628 = vmatpush.msrb.mxu0 %v1505_v6  ;;  %v730_v5 = vand.u32 4294901760, %v729_v55 }
  0x57   :  { %v1508_v14 = vand.u32 4294901760, %v600_v48  ;;  %v698_v22 = vand.u32 4294901760, %v1521_v38  ;;  %677 = vmatpush.msrb.mxu1 %v676_v28 }
  0x59   :  { %v1524_v40 = vsub.f32 %v600_v48, %v1508_v14  ;;  %683 = vmatpush.msrb.mxu1 %v682_v17  ;;  %630 = vmatpush.msrb.mxu0 %v1508_v14  ;;  %v593_v17 = vld [vmem:[%s1668_s5] sm:$0xff] }
  0x5b   :  { %689 = vmatpush.msrb.mxu1 %v688_v34  ;;  %632 = vmatpush.msrb.mxu0 %v1510_v15  ;;  %v643_v34 = vand.u32 4294901760, %v593_v17 }
  0x5d   :  { %634 = vmatpush.msrb.mxu0 %v1515_v4 }
  0x95   :  { %v95_v12 = vpop.f32.mrf.mxu0 }
  0x96   :  { %v96_v16 = vadd.f32 %v990_v11, %v95_v12  ;;  %v1528_v11 = vsub.f32 %v599_v49, %v1510_v15  ;;  %v1530_v12 = vand.u32 4294901760, %v597_v3 }
  0x97   :  { %v126_v23 = vpop.f32.mrf.mxu1  ;;  %v152_v25 = vpop.f32.mrf.mxu2 }
  0x98   :  { %v127_v35 = vadd.f32 %v126_v23, %v96_v16  ;;  %v177_v58 = vpop.f32.mrf.mxu3  ;;  %v704_v23 = vand.u32 4294901760, %v1524_v40  ;;  %v710_v57 = vand.u32 4294901760, %v1528_v11  ;;  %636 = vmatpush.msrb.mxu0 %v1530_v12 }
  0x9a   :  { %v153_v0 = vadd.f32 %v152_v25, %v127_v35  ;;  %v1539_v25 = vsub.f32 %v598_v52, %v1515_v4  ;;  %v699_v35 = vsub.f32 %v1521_v38, %v698_v22  ;;  %v711_v45 = vsub.f32 %v1528_v11, %v710_v57  ;;  %638 = vmatpush.msrb.mxu0 %v1541_v31 }
  0x9c   :  { %v178_v20 = vadd.f32 %v177_v58, %v153_v0  ;;  %v1549_v58 = vsub.f32 %v597_v3, %v1530_v12  ;;  %v716_v41 = vand.u32 4294901760, %v1539_v25  ;;  %v712_v51 = vand.u32 4294901760, %v711_v45 }
  0x9d   :  { %v204_v21 = vpop.f32.mrf.mxu0 }
  0x9e   :  { %v205_v44 = vadd.f32 %v204_v21, %v178_v20  ;;  %v694_v20 = vand.u32 4294901760, %v693_v18  ;;  %v705_v21 = vsub.f32 %v1524_v40, %v704_v23  ;;  %v722_v47 = vand.u32 4294901760, %v1549_v58 }
  0x9f   :  { %v227_v10 = vpop.f32.mrf.mxu1 }
  0xa0   :  { %v228_v54 = vadd.f32 %v227_v10, %v205_v44  ;;  %v700_v44 = vand.u32 4294901760, %v699_v35  ;;  %695 = vmatpush.msrb.mxu1 %v694_v20  ;;  %v706_v49 = vand.u32 4294901760, %v705_v21  ;;  %v717_v10 = vsub.f32 %v1539_v25, %v716_v41 }
  0xa1   :  { %v723_v52 = vsub.f32 %v1549_v58, %v722_v47  ;;  %v745_v20 = vsub.f32 %v593_v17, %v643_v34 }
  0xa2   :  { %v230_v9 = vmax.f32 %v228_v54, 0.0  ;;  %701 = vmatpush.msrb.mxu1 %v700_v44  ;;  %v718_v54 = vand.u32 4294901760, %v717_v10 }
  0xa3   :  { %v724_v3 = vand.u32 4294901760, %v723_v52  ;;  %v746_v44 = vand.u32 4294901760, %v745_v20 }
  0xa4   :  { %v283_v16 = vand.u32 4294901760, %v230_v9  ;;  %707 = vmatpush.msrb.mxu1 %v706_v49 }
  0xa6   :  { %v284_v33 = vsub.f32 %v230_v9, %v283_v16  ;;  %389 = vmatmul.f32.vlgmr.msrb.gmra.mxu3 %v283_v16  ;;  %713 = vmatpush.msrb.mxu1 %v712_v51  ;;  %v595_v9 = vld [vmem:[%s1668_s5 + $0x10] sm:$0xff] }
  0xa7   :  { %810 = vmatpush.msrb.mxu3 %v1417_v26  ;;  %v639_v28 = vand.u32 4294901760, %v595_v9 }
  0xa8   :  { %443 = vmatmul.f32.vlgmr.msra.gmra.mxu0 %v284_v33  ;;  %v285_v0 = vand.u32 4294901760, %v284_v33  ;;  %719 = vmatpush.msrb.mxu1 %v718_v54 }
  0xa9   :  { %812 = vmatpush.msrb.mxu3 %v1419_v27  ;;  %v733_v37 = vsub.f32 %v595_v9, %v639_v28  ;;  %640 = vmatpush.msrb.mxu0 %v639_v28 }
  0xaa   :  { %482 = vmatmul.f32.vlgmr.msra.gmra.mxu1 %v285_v0  ;;  %v286_v43 = vsub.f32 %v284_v33, %v285_v0 }
  0xab   :  { %814 = vmatpush.msrb.mxu3 %v1421_v30  ;;  %725 = vmatpush.msrb.mxu1 %v724_v3  ;;  %v734_v18 = vand.u32 4294901760, %v733_v37 }
  0xac   :  { %v287_v48 = vand.u32 4294901760, %v286_v43 }
  0xad   :  { %816 = vmatpush.msrb.mxu3 %v1432_v39  ;;  %731 = vmatpush.msrb.mxu1 %v730_v5  ;;  %v735_v35 = vsub.f32 %v733_v37, %v734_v18 }
  0xae   :  { %288 = vmatmul.f32.vlgmr.msrb.gmra.mxu2 %v287_v48  ;;  %588 = vmatmul.f32.vlgmr.msra.gmra.mxu3 %v283_v16  ;;  %v747_v48 = vsub.f32 %v745_v20, %v746_v44 }
  0xaf   :  { %757 = vmatpush.msrb.mxu2 %v1442_v60  ;;  %818 = vmatpush.msrb.mxu3 %v1434_v53  ;;  %v736_v21 = vand.u32 4294901760, %v735_v35 }
  0xb0   :  { %v748_v49 = vand.u32 4294901760, %v747_v48 }
  0xb1   :  { %760 = vmatpush.msrb.mxu2 %v1445_v61  ;;  %820 = vmatpush.msrb.mxu3 %v1436_v56 }
  0xb2   :  { %737 = vmatpush.msrb.mxu1 %v736_v21 }
  0xb3   :  { %763 = vmatpush.msrb.mxu2 %v1448_v62  ;;  %822 = vmatpush.msrb.mxu3 %v1451_v63 }
  0xb5   :  { %766 = vmatpush.msrb.mxu2 %v1454_v1  ;;  %824 = vmatpush.msrb.mxu3 %v1505_v6 }
  0xb6   :  { %551 = vmatmul.f32.vlgmr.msra.gmra.mxu2 %v283_v16  ;;  %v641_v16 = vand.u32 4294901760, %v594_v29 }
  0xb7   :  { %769 = vmatpush.msrb.mxu2 %v1457_v2  ;;  %826 = vmatpush.msrb.mxu3 %v1508_v14 }
  0xb8   :  { %v739_v33 = vsub.f32 %v594_v29, %v641_v16  ;;  %642 = vmatpush.msrb.mxu0 %v641_v16 }
  0xb9   :  { %772 = vmatpush.msrb.mxu2 %v1460_v7  ;;  %828 = vmatpush.msrb.mxu3 %v1510_v15 }
  0xba   :  { %v740_v0 = vand.u32 4294901760, %v739_v33  ;;  %644 = vmatpush.msrb.mxu0 %v643_v34 }
  0xbb   :  { %775 = vmatpush.msrb.mxu2 %v1469_v36  ;;  %830 = vmatpush.msrb.mxu3 %v1515_v4 }
  0xbc   :  { %851 = vmatpush.msra.mxu0 %v656_v8  ;;  %v741_v43 = vsub.f32 %v739_v33, %v740_v0 }
  0xbd   :  { %778 = vmatpush.msrb.mxu2 %v1521_v38  ;;  %832 = vmatpush.msrb.mxu3 %v1530_v12 }
  0xbe   :  { %855 = vmatpush.msra.mxu0 %v662_v13  ;;  %v742_v45 = vand.u32 4294901760, %v741_v43 }
  0xbf   :  { %781 = vmatpush.msrb.mxu2 %v1524_v40  ;;  %834 = vmatpush.msrb.mxu3 %v1541_v31 }
  0xc0   :  { %859 = vmatpush.msra.mxu0 %v668_v19  ;;  %743 = vmatpush.msrb.mxu1 %v742_v45 }
  0xc1   :  { %784 = vmatpush.msrb.mxu2 %v1528_v11  ;;  %836 = vmatpush.msrb.mxu3 %v639_v28 }
  0xc2   :  { %863 = vmatpush.msra.mxu0 %v674_v24  ;;  %749 = vmatpush.msrb.mxu1 %v748_v49 }
  0xc3   :  { %787 = vmatpush.msrb.mxu2 %v1539_v25  ;;  %838 = vmatpush.msrb.mxu3 %v641_v16 }
  0xc4   :  { %918 = vmatpush.msra.mxu1 %v1417_v26  ;;  %867 = vmatpush.msra.mxu0 %v680_v32  ;;  %v991_v26 = vld [vmem:[%s1667_s4] ss:$0 sm:$0xff] }
  0xc5   :  { %790 = vmatpush.msrb.mxu2 %v1549_v58  ;;  %840 = vmatpush.msrb.mxu3 %v643_v34 }
  0xc6   :  { %920 = vmatpush.msra.mxu1 %v1419_v27  ;;  %871 = vmatpush.msra.mxu0 %v686_v46  ;;  %v992_v46 = vld [vmem:[%s1669_s6] ss:$0 sm:$0xff] }
  0xc7   :  { %793 = vmatpush.msrb.mxu2 %v1558_v42 }
  0xc8   :  { %922 = vmatpush.msra.mxu1 %v1421_v30  ;;  %875 = vmatpush.msra.mxu0 %v692_v59 }
  0xc9   :  { %796 = vmatpush.msrb.mxu2 %v733_v37 }
  0xca   :  { %924 = vmatpush.msra.mxu1 %v1432_v39  ;;  %879 = vmatpush.msra.mxu0 %v698_v22 }
  0xcb   :  { %799 = vmatpush.msrb.mxu2 %v739_v33 }
  0xcc   :  { %926 = vmatpush.msra.mxu1 %v1434_v53  ;;  %883 = vmatpush.msra.mxu0 %v704_v23 }
  0xcd   :  { %802 = vmatpush.msrb.mxu2 %v745_v20 }
  0xce   :  { %928 = vmatpush.msra.mxu1 %v1436_v56  ;;  %887 = vmatpush.msra.mxu0 %v710_v57 }
  0xd0   :  { %930 = vmatpush.msra.mxu1 %v1451_v63  ;;  %891 = vmatpush.msra.mxu0 %v716_v41 }
  0xd2   :  { %932 = vmatpush.msra.mxu1 %v1505_v6  ;;  %895 = vmatpush.msra.mxu0 %v722_v47 }
  0xd4   :  { %934 = vmatpush.msra.mxu1 %v1508_v14  ;;  %899 = vmatpush.msra.mxu0 %v728_v50 }
  0xd6   :  { %936 = vmatpush.msra.mxu1 %v1510_v15  ;;  %903 = vmatpush.msra.mxu0 %v734_v18 }
  0xd8   :  { %938 = vmatpush.msra.mxu1 %v1515_v4  ;;  %907 = vmatpush.msra.mxu0 %v740_v0 }
  0xda   :  { %940 = vmatpush.msra.mxu1 %v1530_v12  ;;  %911 = vmatpush.msra.mxu0 %v746_v44 }
  0xdc   :  { %942 = vmatpush.msra.mxu1 %v1541_v31 }
  0xde   :  { %944 = vmatpush.msra.mxu1 %v639_v28 }
  0xe0   :  { %946 = vmatpush.msra.mxu1 %v641_v16 }
  0xe2   :  { %948 = vmatpush.msra.mxu1 %v643_v34 }
 0x125   :  { %v444_v56 = vpop.f32.mrf.mxu0 }
 0x127   :  { %v483_v61 = vpop.f32.mrf.mxu1 }
 0x129   :  { %v390_v27 = vpop.f32.mrf.mxu3 }
 0x131   :  { %v289_v30 = vpop.f32.mrf.mxu2  ;;  %v589_v2 = vpop.f32.mrf.mxu3 }
 0x132   :  { %v290_v39 = vadd.f32 %v991_v26, %v289_v30 }
 0x134   :  { %v391_v53 = vadd.f32 %v390_v27, %v290_v39 }
 0x136   :  { %v445_v60 = vadd.f32 %v444_v56, %v391_v53 }
 0x138   :  { %v484_v62 = vadd.f32 %v483_v61, %v445_v60 }
 0x139   :  { %v552_v63 = vpop.f32.mrf.mxu2 }
 0x13a   :  { %v553_v1 = vadd.f32 %v552_v63, %v484_v62 }
 0x13c   :  { %v590_v7 = vadd.f32 %v589_v2, %v553_v1 }
 0x13e   :  { %v592_v8 = vmax.f32 %v590_v7, 0.0 }
 0x140   :  { %v645_v13 = vand.u32 4294901760, %v592_v8 }
 0x142   :  { %v646_v19 = vsub.f32 %v592_v8, %v645_v13  ;;  %751 = vmatmul.f32.vlgmr.msrb.gmra.mxu1 %v645_v13 }
 0x144   :  { %805 = vmatmul.f32.vlgmr.msrb.gmra.mxu2 %v646_v19  ;;  %v647_v24 = vand.u32 4294901760, %v646_v19 }
 0x146   :  { %844 = vmatmul.f32.vlgmr.msrb.gmra.mxu3 %v647_v24  ;;  %v648_v32 = vsub.f32 %v646_v19, %v647_v24 }
 0x148   :  { %v649_v36 = vand.u32 4294901760, %v648_v32 }
 0x14a   :  { %650 = vmatmul.f32.vlgmr.msrb.gmra.mxu0 %v649_v36  ;;  %950 = vmatmul.f32.vlgmr.msra.gmra.mxu1 %v645_v13 }
 0x152   :  { %913 = vmatmul.f32.vlgmr.msra.gmra.mxu0 %v645_v13 }
 0x1bf   :  { %v752_v59 = vpop.f32.mrf.mxu1 }
 0x1c7   :  { %v651_v6 = vpop.f32.mrf.mxu0  ;;  %v806_v4 = vpop.f32.mrf.mxu2 }
 0x1c8   :  { %v652_v14 = vadd.f32 %v992_v46, %v651_v6  ;;  %v951_v23 = vpop.f32.mrf.mxu1 }
 0x1c9   :  { %v845_v40 = vpop.f32.mrf.mxu3 }
 0x1ca   :  { %v753_v15 = vadd.f32 %v752_v59, %v652_v14 }
 0x1cc   :  { %v807_v38 = vadd.f32 %v806_v4, %v753_v15 }
 0x1ce   :  { %v846_v11 = vadd.f32 %v845_v40, %v807_v38 }
 0x1cf   :  { %v914_v12 = vpop.f32.mrf.mxu0 }
 0x1d0   :  { %v915_v22 = vadd.f32 %v914_v12, %v846_v11 }
 0x1d2   :  { %v952_v25 = vadd.f32 %v951_v23, %v915_v22 }
 0x1d4   :  { %v955_v31 = vsel %vm954_vm2, %v952_v25, -inf }
 0x1d5   :  { %956 = vmax.xlane.f32.xlu0 %v955_v31 }
 0x248   :  { %v957_v57 = vpop.xlane.xlu0 %956 }
 0x249   :  { %v958_v58 = vsub.f32 %v952_v25, %v957_v57 }
 0x24b   :  { %v959_v41 = vmul.f32 1.442695, %v958_v58 }
 0x24d   :  { %993 = vpow2.f32 %v959_v41 }
 0x253   :  { %v994_v42 = vpop.eup %993 }
 0x254   :  { %v961_v47 = vsel %vm954_vm2, %v994_v42, 0.0 }
 0x255   :  { %962 = vadd.xlane.f32.xlu0 %v961_v47 }
 0x2c8   :  { %v963_v10 = vpop.xlane.xlu0 %962 }
 0x2c9   :  { %995 = vrcp.f32 %v963_v10  ;;  %v975_v54 = vand.u32 2147483648, %v963_v10  ;;  %v973_v3 = vand.u32 2147483647, %v963_v10  ;;  %vm969_vm4 = vweird.f32 %v963_v10 }
 0x2cb   :  { %v976_v9 = vor.u32 1.1754944e-38, %v975_v54  ;;  %vm974_vm6 = vcmp.eq.f32.partialorder %v973_v3, 8.507059e+37 }
 0x2cf   :  { %v996_v50 = vpop.eup %995 }
 0x2d0   :  { %v965_v51 = vmul.f32 %v996_v50, %v963_v10  ;;  %vm970_vm3 = vweird.f32 %v996_v50 }
 0x2d1   :  { %vm971_vm5 = vmor %vm969_vm4, %vm970_vm3 }
 0x2d2   :  { %v966_v52 = vsub.f32 1.0, %v965_v51 }
 0x2d4   :  { %v967_v55 = vmul.f32 %v996_v50, %v966_v52 }
 0x2d6   :  { %v968_v5 = vadd.f32 %v996_v50, %v967_v55 }
 0x2d8   :  { %v972_v28 = vsel %vm971_vm5, %v996_v50, %v968_v5 }
 0x2d9   :  { %v977_v29 = vsel %vm974_vm6, %v976_v9, %v972_v28 }
 0x2da   :  { %v978_v37 = vmul.f32 %v994_v42, %v977_v29 }
 0x2dc   :  { %979 = vst.msk [vmem:[%s1670_s7] sm:$0xff] %vm954_vm2, %v978_v37 }
 0x2dd   :  { %984 = vsyncpa [#allocation3], 1 }
 0x2de   :  { %985 = vsyncpa [#allocation5], 1 }

</bundles_post_ra>
